<compile_context>
chip_gen: v5e
topology: v5e:2x2
jax: 0.10.0
libtpu: 0.0.40
codegen_flags: <defaults>
</compile_context>

<pallas_src>
import functools

import jax
import jax.numpy as jnp
from jax.experimental import pallas as pl
from jax.experimental.pallas import tpu as pltpu

ABITS = 8
_EPS = 1e-12

_LANES_CANDIDATES = (1024, 512, 256, 128)   # lane-dense widths (multiples of 128)
_FAST_PATH_MAX_BYTES = 2 * 1024 * 1024      # f32 working-set bound for the 1-pass path
_TARGET_TILE_ELEMS = 512 * 1024             # ~2 MiB f32 tiles for the 2-phase path
_VMEM_LIMIT = 32 * 1024 * 1024              # safe on v5e/v6e/v7x


def _cdiv(a, b):
    return -(-a // b)


# ---------------------------------------------------------------------------
# Kernels
# ---------------------------------------------------------------------------
def _quant_small_kernel(x_ref, o_ref, *, qmin, qmax, eps):
    """Whole array resident in VMEM: calibrate + quantize in one pass."""
    x = x_ref[...].astype(jnp.float32)
    m = jnp.max(jnp.abs(x), axis=0, keepdims=True)     # sublane reduce -> (1, lanes)
    m = jnp.max(m, axis=1, keepdims=True)               # lane (XLU) reduce -> (1, 1)
    s = jnp.maximum(m / qmax, eps)                       # eps clamp: no NaN/Inf
    inv = 1.0 / s
    o_ref[...] = (jnp.clip(jnp.round(x * inv), qmin, qmax) * s).astype(o_ref.dtype)


def _quant_two_phase_kernel(x_ref, o_ref, maxabs_ref, scale_ref, inv_ref, *,
                            qmin, qmax, eps, valid_rows, bm):
    """Fused calibration (phase 0) + quantization (phase 1) over a row-block grid."""
    p = pl.program_id(0)   # phase: 0 = max|x| calibration, 1 = quantize
    j = pl.program_id(1)   # row-block index

    @pl.when((p == 0) & (j == 0))
    def _init():
        maxabs_ref[...] = jnp.zeros_like(maxabs_ref)

    @pl.when(p == 0)
    def _calibrate():
        a = jnp.abs(x_ref[...].astype(jnp.float32))
        # Mask out-of-bounds rows of a (possibly partial) edge block: their
        # contents are undefined and must not contaminate the max.
        row = j * bm + jax.lax.broadcasted_iota(jnp.int32, a.shape, 0)
        a = jnp.where(row < valid_rows, a, 0.0)
        # Pure per-tile elementwise/sublane max into the running (1, lanes)
        # accumulator; the expensive cross-lane reduce happens once, below.
        maxabs_ref[...] = jnp.maximum(maxabs_ref[...],
                                      jnp.max(a, axis=0, keepdims=True))

    @pl.when((p == 1) & (j == 0))
    def _finalize_scale():
        m = jnp.max(maxabs_ref[...], axis=1, keepdims=True)   # (1, 1) XLU reduce, once
        s = jnp.maximum(m / qmax, eps)
        scale_ref[...] = s
        inv_ref[...] = 1.0 / s

    @pl.when(p == 1)
    def _quantize():
        x = x_ref[...].astype(jnp.float32)
        s = scale_ref[...]      # (1, 1) broadcast
        inv = inv_ref[...]      # (1, 1) broadcast; hot path is mul/round/clip/mul
        o_ref[...] = (jnp.clip(jnp.round(x * inv), qmin, qmax) * s).astype(o_ref.dtype)


# ---------------------------------------------------------------------------
# Wrapper
# ---------------------------------------------------------------------------
def fake_quant(x, *, abits=ABITS, fast_path_max_bytes=_FAST_PATH_MAX_BYTES,
               row_block=None):
    """Quantizer.forward for afmt='int', scale_method='max', cali_mode='global'."""
    if abits <= 0:
        return x  # quantizer disabled (module default abits=0)

    qmax = float(2 ** (abits - 1) - 1)
    qmin = -float(2 ** (abits - 1))

    orig_shape, dtype = x.shape, x.dtype
    n = x.size
    flat = x.reshape(-1)

    # Lane-dense 1-D view: pick the widest lane width that divides n (free
    # reshape, no pad).  Otherwise pad to the next multiple of 1024
    # (<= 1023 elements of pad, zeros do not affect max|x|).
    lanes = next((l for l in _LANES_CANDIDATES if n % l == 0), 0)
    pad = 0
    if lanes == 0:
        lanes = _LANES_CANDIDATES[0]
        pad = (-n) % lanes
        flat = jnp.pad(flat, (0, pad))
    rows = (n + pad) // lanes
    x2 = flat.reshape(rows, lanes)

    if row_block is None and rows * lanes * 4 <= fast_path_max_bytes:
        # --- single-pass VMEM-resident fast path: 1 HBM read + 1 HBM write ---
        out2 = pl.pallas_call(
            functools.partial(_quant_small_kernel, qmin=qmin, qmax=qmax, eps=_EPS),
            out_shape=jax.ShapeDtypeStruct((rows, lanes), dtype),
            compiler_params=pltpu.CompilerParams(vmem_limit_bytes=_VMEM_LIMIT),
        )(x2)
    else:
        # --- fused two-phase path: 2 HBM reads + 1 HBM write, one launch ---
        if row_block is not None:
            bm = int(row_block)                      # debug knob (multiple of 8)
        else:
            bm = max(8, (_TARGET_TILE_ELEMS // lanes) // 8 * 8)
        if bm >= rows:
            bm = rows                                # full extent: always legal
        nblocks = _cdiv(rows, bm)

        kernel = functools.partial(
            _quant_two_phase_kernel,
            qmin=qmin, qmax=qmax, eps=_EPS, valid_rows=rows, bm=bm)

        out2 = pl.pallas_call(
            kernel,
            out_shape=jax.ShapeDtypeStruct((rows, lanes), dtype),
            grid_spec=pltpu.PrefetchScalarGridSpec(
                num_scalar_prefetch=0,
                grid=(2, nblocks),
                in_specs=[pl.BlockSpec((bm, lanes), lambda p, j: (j, 0))],
                # p*j keeps output block 0 resident during the whole
                # calibration phase -> no garbage writebacks, exactly one
                # HBM write per output block during phase 1.
                out_specs=pl.BlockSpec((bm, lanes), lambda p, j: (p * j, 0)),
                scratch_shapes=[
                    pltpu.VMEM((1, lanes), jnp.float32),   # running max|x|
                    pltpu.VMEM((1, 1), jnp.float32),       # scale
                    pltpu.VMEM((1, 1), jnp.float32),       # 1 / scale
                ],
            ),
            compiler_params=pltpu.CompilerParams(
                # Phase 1 depends on every phase-0 block -> both axes arbitrary.
                dimension_semantics=("arbitrary", "arbitrary"),
                vmem_limit_bytes=_VMEM_LIMIT),
        )(x2)

    out_flat = out2.reshape(-1)
    if pad:
        out_flat = out_flat[:n]
    return out_flat.reshape(orig_shape)


_fake_quant = jax.jit(
    fake_quant, static_argnames=("abits", "fast_path_max_bytes", "row_block"))


def quant_last(*xs, abits=ABITS):
    """QuantLast.forward: fake-quantize every input; unwrap a single tensor."""
    outs = tuple(_fake_quant(x, abits=abits) for x in xs)
    return outs[0] if len(outs) == 1 else outs


def _reference(x, *, abits=ABITS):
    """Pure-JAX reference of the same symmetric-int fake-quantizer."""
    qmax = float(2 ** (abits - 1) - 1)
    qmin = -float(2 ** (abits - 1))
    xf = x.astype(jnp.float32)
    s = jnp.maximum(jnp.max(jnp.abs(xf)) / qmax, _EPS)
    return (jnp.clip(jnp.round(xf * (1.0 / s)), qmin, qmax) * s).astype(x.dtype)


if __name__ == "__main__":
    key = jax.random.PRNGKey(0)
    k1, k2, k3, k4 = jax.random.split(key, 4)

    # single-tensor path (out_num=1): QuantLast(x) -> quantized x
    x = jax.random.normal(k1, (2, 8, 256), dtype=jnp.float32)
    out = jax.block_until_ready(quant_last(x))
    assert out.shape == x.shape and out.dtype == x.dtype
    assert jnp.max(jnp.abs(out - _reference(x))) < 1e-5, "single-tensor mismatch"

    # tuple path (out_num=2): ragged (non-128) shape and bf16 native-dtype I/O
    a = jax.random.normal(k2, (4, 130), dtype=jnp.float32)
    b = jax.random.normal(k3, (3, 5, 128), dtype=jnp.bfloat16)
    oa, ob = quant_last(a, b)
    jax.block_until_ready((oa, ob))
    assert oa.shape == a.shape and ob.shape == b.shape and ob.dtype == jnp.bfloat16
    assert jnp.max(jnp.abs(oa - _reference(a))) < 1e-5, "tuple[0] mismatch"
    assert jnp.max(jnp.abs(ob.astype(jnp.float32)
                           - _reference(b).astype(jnp.float32))) < 1e-5, "tuple[1] mismatch"

    # exercise the fused two-phase (large-tensor) kernel on a small array,
    # including a partial edge row-block that needs masking
    c = jax.random.normal(k4, (16, 1100), dtype=jnp.float32)
    oc = jax.block_until_ready(
        _fake_quant(c, abits=ABITS, fast_path_max_bytes=0, row_block=8))
    assert oc.shape == c.shape
    assert jnp.max(jnp.abs(oc - _reference(c))) < 1e-5, "two-phase mismatch"

    print("KERNEL_OK")
</pallas_src>

<mosaic_0001>
module attributes {stable_mosaic.version = 11 : i64} {
  func.func @_quant_small_kernel(%arg0: memref<4x1024xf32, #tpu.memory_space<vmem>>, %arg1: memref<4x1024xf32, #tpu.memory_space<vmem>>) attributes {dimension_semantics = [], scalar_prefetch = 0 : i64, scratch_operands = 0 : i64, tpu.core_type = #tpu.core_type<tc>} {
    %c0 = arith.constant 0 : index
    %c0_0 = arith.constant 0 : index
    %0 = vector.load %arg0[%c0, %c0_0] : memref<4x1024xf32, #tpu.memory_space<vmem>>, vector<4x1024xf32>
    %1 = math.absf %0 : vector<4x1024xf32>
    %cst = arith.constant dense<0xFF800000> : vector<1024xf32>
    %2 = vector.multi_reduction <maximumf>, %1, %cst [0] : vector<4x1024xf32> to vector<1024xf32>
    %3 = vector.shape_cast %2 : vector<1024xf32> to vector<1x1024xf32>
    %cst_1 = arith.constant dense<0xFF800000> : vector<1xf32>
    %4 = vector.multi_reduction <maximumf>, %3, %cst_1 [1] : vector<1x1024xf32> to vector<1xf32>
    %5 = vector.shape_cast %4 : vector<1xf32> to vector<1x1xf32>
    %cst_2 = arith.constant 1.270000e+02 : f32
    %6 = vector.broadcast %cst_2 : f32 to vector<1x1xf32>
    %7 = arith.divf %5, %6 : vector<1x1xf32>
    %cst_3 = arith.constant 9.99999996E-13 : f32
    %8 = vector.broadcast %cst_3 : f32 to vector<1x1xf32>
    %9 = arith.maximumf %7, %8 : vector<1x1xf32>
    %cst_4 = arith.constant 1.000000e+00 : f32
    %10 = vector.broadcast %cst_4 : f32 to vector<1x1xf32>
    %11 = arith.divf %10, %9 : vector<1x1xf32>
    %12 = vector.broadcast %11 : vector<1x1xf32> to vector<4x1024xf32>
    %13 = arith.mulf %0, %12 : vector<4x1024xf32>
    %14 = math.roundeven %13 : vector<4x1024xf32>
    %cst_5 = arith.constant -1.280000e+02 : f32
    %cst_6 = arith.constant 1.270000e+02 : f32
    %15 = vector.broadcast %cst_5 : f32 to vector<4x1024xf32>
    %16 = arith.maximumf %15, %14 : vector<4x1024xf32>
    %17 = vector.broadcast %cst_6 : f32 to vector<4x1024xf32>
    %18 = arith.minimumf %17, %16 : vector<4x1024xf32>
    %19 = vector.broadcast %9 : vector<1x1xf32> to vector<4x1024xf32>
    %20 = arith.mulf %18, %19 : vector<4x1024xf32>
    %c0_7 = arith.constant 0 : index
    %c0_8 = arith.constant 0 : index
    %21 = vector.load %arg1[%c0_7, %c0_8] : memref<4x1024xf32, #tpu.memory_space<vmem>>, vector<4x1024xf32>
    tpu.vector_store %arg1[%c0_7, %c0_8], %20 {strides = array<i32>} : memref<4x1024xf32, #tpu.memory_space<vmem>>, vector<4x1024xf32>,
    return
  }
}

</mosaic_0001>

<bundles_post_ra>
// kernel: fake_quant.1
= control target key start
LH: loop header
LB: loop body
LE: loop exit
PB: predicated region body
PF: predicated region fallthrough
CT: control target
= control target key end

     0   :  { %vm43_vm0 = vcmask 1043456   ;;  %s268_s0 = inlined_call_operand.vmem [shape: f32[4,1024], index: 0, kind: input, shape index: {}]   ;;  %s269_s1 = inlined_call_operand.vmem [shape: f32[4,1024], index: 1, kind: output, shape index: {}]  }
   0x1   :  { %v212_v0 = vld [vmem:[%s268_s0] sm:$0xff]  ;;  %v217_v1 = vld [vmem:[%s268_s0 + $0x8] sm:$0xff]  ;;  %v222_v2 = vld [vmem:[%s268_s0 + $0x10] sm:$0xff] }
   0x2   :  { %v227_v3 = vld [vmem:[%s268_s0 + $0x18] sm:$0xff]  ;;  %v12_v4 = vand.u32 2147483647, %v212_v0  ;;  %v13_v5 = vand.u32 2147483647, %v217_v1 }
   0x3   :  { %v14_v6 = vand.u32 2147483647, %v222_v2  ;;  %v15_v7 = vand.u32 2147483647, %v227_v3 }
   0x4   :  { %20 = vst [vmem:[#allocation1] ss:$2 sm:$0xff] %v12_v4 }
   0x5   :  { %22 = vst [vmem:[#allocation1 + $0x10] ss:$2 sm:$0xff] %v13_v5 }
   0x6   :  { %24 = vst [vmem:[#allocation1 + $0x20] ss:$2 sm:$0xff] %v14_v6 }
   0x7   :  { %26 = vst [vmem:[#allocation1 + $0x30] ss:$2 sm:$0xff] %v15_v7 }
   0xb   :  { %v27_v8 = vld.sshfl [vmem:[#allocation1] sm:$0xff pattern:$0x75316420]  ;;  %v28_v9 = vld.sshfl [vmem:[#allocation1 + $0x8] sm:$0xff pattern:$0x75316420] }
   0xc   :  { %v29_v10 = vld.sshfl [vmem:[#allocation1 + $0x10] sm:$0xff pattern:$0x75316420]  ;;  %v30_v11 = vld.sshfl [vmem:[#allocation1 + $0x18] sm:$0xff pattern:$0x75316420] }
   0xd   :  { %v31_v12 = vld.sshfl [vmem:[#allocation1 + $0x20] sm:$0xff pattern:$0x75316420]  ;;  %v32_v13 = vld.sshfl [vmem:[#allocation1 + $0x28] sm:$0xff pattern:$0x75316420] }
   0xe   :  { %v33_v14 = vld.sshfl [vmem:[#allocation1 + $0x30] sm:$0xff pattern:$0x75316420]  ;;  %v34_v15 = vld.sshfl [vmem:[#allocation1 + $0x38] sm:$0xff pattern:$0x75316420] }
   0xf   :  { %v44_v16 = vsel %vm43_vm0, %v27_v8, -inf  ;;  %v51_v17 = vsel %vm43_vm0, %v28_v9, -inf  ;;  %v58_v18 = vsel %vm43_vm0, %v29_v10, -inf  ;;  %v65_v19 = vsel %vm43_vm0, %v30_v11, -inf }
  0x10   :  { %v45_v20 = vrot.slane %v44_v16, 4  ;;  %v52_v21 = vrot.slane %v51_v17, 4  ;;  %v59_v22 = vrot.slane %v58_v18, 4  ;;  %v66_v23 = vrot.slane %v65_v19, 4 }
  0x11   :  { %v72_v24 = vsel %vm43_vm0, %v31_v12, -inf  ;;  %v79_v25 = vsel %vm43_vm0, %v32_v13, -inf  ;;  %v86_v26 = vsel %vm43_vm0, %v33_v14, -inf  ;;  %v93_v27 = vsel %vm43_vm0, %v34_v15, -inf }
  0x12   :  { %v46_v28 = vmax.f32 %v44_v16, %v45_v20  ;;  %v53_v29 = vmax.f32 %v51_v17, %v52_v21  ;;  %v60_v30 = vmax.f32 %v58_v18, %v59_v22  ;;  %v67_v31 = vmax.f32 %v65_v19, %v66_v23 }
  0x13   :  { %v73_v32 = vrot.slane %v72_v24, 4  ;;  %v80_v33 = vrot.slane %v79_v25, 4  ;;  %v87_v34 = vrot.slane %v86_v26, 4  ;;  %v94_v35 = vrot.slane %v93_v27, 4 }
  0x14   :  { %v47_v36 = vrot.slane %v46_v28, 2  ;;  %v54_v37 = vrot.slane %v53_v29, 2  ;;  %v61_v38 = vrot.slane %v60_v30, 2  ;;  %v68_v39 = vrot.slane %v67_v31, 2 }
  0x15   :  { %v74_v40 = vmax.f32 %v72_v24, %v73_v32  ;;  %v81_v41 = vmax.f32 %v79_v25, %v80_v33  ;;  %v88_v42 = vmax.f32 %v86_v26, %v87_v34  ;;  %v95_v43 = vmax.f32 %v93_v27, %v94_v35 }
  0x16   :  { %v48_v44 = vmax.f32 %v46_v28, %v47_v36  ;;  %v55_v45 = vmax.f32 %v53_v29, %v54_v37  ;;  %v62_v46 = vmax.f32 %v60_v30, %v61_v38  ;;  %v69_v47 = vmax.f32 %v67_v31, %v68_v39 }
  0x17   :  { %v75_v48 = vrot.slane %v74_v40, 2  ;;  %v82_v49 = vrot.slane %v81_v41, 2  ;;  %v89_v50 = vrot.slane %v88_v42, 2  ;;  %v96_v51 = vrot.slane %v95_v43, 2 }
  0x18   :  { %v49_v52 = vrot.slane %v48_v44, 1  ;;  %v56_v53 = vrot.slane %v55_v45, 1  ;;  %v63_v54 = vrot.slane %v62_v46, 1  ;;  %v70_v55 = vrot.slane %v69_v47, 1 }
  0x19   :  { %v76_v56 = vmax.f32 %v74_v40, %v75_v48  ;;  %v83_v57 = vmax.f32 %v81_v41, %v82_v49  ;;  %v90_v58 = vmax.f32 %v88_v42, %v89_v50  ;;  %v97_v59 = vmax.f32 %v95_v43, %v96_v51 }
  0x1a   :  { %v50_v60 = vmax.f32 %v48_v44, %v49_v52  ;;  %v57_v61 = vmax.f32 %v55_v45, %v56_v53  ;;  %v64_v62 = vmax.f32 %v62_v46, %v63_v54  ;;  %v71_v63 = vmax.f32 %v69_v47, %v70_v55 }
  0x1b   :  { %v77_v4 = vrot.slane %v76_v56, 1  ;;  %v84_v5 = vrot.slane %v83_v57, 1  ;;  %v91_v6 = vrot.slane %v90_v58, 1  ;;  %v98_v7 = vrot.slane %v97_v59, 1 }
  0x1c   :  { %v198_v19 = vmov 127.0  }
  0x1d   :  { %v78_v8 = vmax.f32 %v76_v56, %v77_v4  ;;  %v85_v9 = vmax.f32 %v83_v57, %v84_v5  ;;  %v92_v10 = vmax.f32 %v90_v58, %v91_v6  ;;  %v99_v11 = vmax.f32 %v97_v59, %v98_v7 }
  0x1e   :  { %194 = vrcp.f32 %v198_v19 }
  0x1f   :  { %v100_v12 = vmax.f32 %v50_v60, %v78_v8  ;;  %v101_v13 = vmax.f32 %v57_v61, %v85_v9  ;;  %v102_v14 = vmax.f32 %v64_v62, %v92_v10  ;;  %v103_v15 = vmax.f32 %v71_v63, %v99_v11 }
  0x21   :  { %v104_v16 = vmax.f32 %v100_v12, %v101_v13  ;;  %v105_v17 = vmax.f32 %v102_v14, %v103_v15 }
  0x23   :  { %v106_v18 = vmax.f32 %v104_v16, %v105_v17 }
  0x24   :  { %v195_v20 = vpop.eup %194 }
  0x25   :  { %107 = vmax.xlane.f32.xlu0 %v106_v18  ;;  %v110_v21 = vmul.f32 127.0, %v195_v20  ;;  %vm114_vm1 = vweird.f32 %v195_v20 }
  0x27   :  { %v111_v22 = vsub.f32 1.0, %v110_v21 }
  0x29   :  { %v112_v23 = vmul.f32 %v195_v20, %v111_v22 }
  0x2b   :  { %v113_v24 = vadd.f32 %v195_v20, %v112_v23 }
  0x2d   :  { %v115_v25 = vsel %vm114_vm1, %v195_v20, %v113_v24 }
  0x98   :  { %v108_v26 = vpop.xlane.xlu0 %107 }
  0x99   :  { %v116_v27 = vmul.f32 %v115_v25, %v108_v26 }
  0x9b   :  { %v241_v28 = vmax.f32 %v116_v27, 1e-12 }
  0x9d   :  { %196 = vrcp.f32 %v241_v28  ;;  %v129_v32 = vand.u32 2147483648, %v241_v28  ;;  %v127_v34 = vand.u32 2147483647, %v241_v28  ;;  %vm123_vm3 = vweird.f32 %v241_v28 }
  0x9f   :  { %v130_v36 = vor.u32 1.1754944e-38, %v129_v32  ;;  %vm128_vm5 = vcmp.eq.f32.partialorder %v127_v34, 8.507059e+37 }
  0xa3   :  { %v197_v29 = vpop.eup %196 }
  0xa4   :  { %v119_v30 = vmul.f32 %v197_v29, %v241_v28  ;;  %vm124_vm2 = vweird.f32 %v197_v29 }
  0xa5   :  { %vm125_vm4 = vmor %vm123_vm3, %vm124_vm2 }
  0xa6   :  { %v120_v31 = vsub.f32 1.0, %v119_v30 }
  0xa8   :  { %v121_v33 = vmul.f32 %v197_v29, %v120_v31 }
  0xaa   :  { %v122_v35 = vadd.f32 %v197_v29, %v121_v33 }
  0xac   :  { %v126_v37 = vsel %vm125_vm4, %v197_v29, %v122_v35 }
  0xad   :  { %v131_v38 = vsel %vm128_vm5, %v130_v36, %v126_v37 }
  0xae   :  { %v133_v39 = vmul.f32 %v131_v38, %v212_v0  ;;  %v134_v40 = vmul.f32 %v131_v38, %v217_v1  ;;  %v135_v41 = vmul.f32 %v131_v38, %v222_v2  ;;  %v136_v42 = vmul.f32 %v131_v38, %v227_v3 }
  0xb0   :  { %v163_v43 = vcvt.f32.s32 %v133_v39  ;;  %v171_v44 = vcvt.f32.s32 %v134_v40  ;;  %v179_v45 = vcvt.f32.s32 %v135_v41  ;;  %v161_v46 = vand.u32 2147483647, %v133_v39 }
  0xb1   :  { %v169_v48 = vand.u32 2147483647, %v134_v40  ;;  %v166_v52 = vand.u32 2147483648, %v133_v39  ;;  %v177_v53 = vand.u32 2147483647, %v135_v41  ;;  %v187_v54 = vcvt.f32.s32 %v136_v42 }
  0xb2   :  { %v164_v47 = vcvt.s32.f32 %v163_v43  ;;  %v172_v49 = vcvt.s32.f32 %v171_v44  ;;  %v180_v50 = vcvt.s32.f32 %v179_v45  ;;  %v174_v0 = vand.u32 2147483648, %v134_v40 }
  0xb3   :  { %v182_v1 = vand.u32 2147483648, %v135_v41  ;;  %vm162_vm6 = vcmp.lt.f32.partialorder %v161_v46, 8388608.0  ;;  %v188_v57 = vcvt.s32.f32 %v187_v54  ;;  %vm170_vm7 = vcmp.lt.f32.partialorder %v169_v48, 8388608.0 }
  0xb4   :  { %v165_v51 = vand.u32 2147483647, %v164_v47  ;;  %v173_v55 = vand.u32 2147483647, %v172_v49  ;;  %v181_v56 = vand.u32 2147483647, %v180_v50 }
  0xb5   :  { %v185_v59 = vand.u32 2147483647, %v136_v42  ;;  %vm178_vm8 = vcmp.lt.f32.partialorder %v177_v53, 8388608.0  ;;  %v189_v61 = vand.u32 2147483647, %v188_v57  ;;  %v190_v62 = vand.u32 2147483648, %v136_v42 }
  0xb6   :  { %v167_v2 = vor.u32 %v166_v52, %v165_v51  ;;  %v175_v3 = vor.u32 %v174_v0, %v173_v55  ;;  %v183_v58 = vor.u32 %v182_v1, %v181_v56 }
  0xb7   :  { %v191_v6 = vor.u32 %v190_v62, %v189_v61  ;;  %vm186_vm9 = vcmp.lt.f32.partialorder %v185_v59, 8388608.0 }
  0xb8   :  { %v168_v60 = vsel %vm162_vm6, %v167_v2, %v133_v39  ;;  %v176_v63 = vsel %vm170_vm7, %v175_v3, %v134_v40  ;;  %v184_v4 = vsel %vm178_vm8, %v183_v58, %v135_v41 }
  0xb9   :  { %v141_v5 = vmax.f32 %v168_v60, -128.0  ;;  %v142_v7 = vmax.f32 %v176_v63, -128.0  ;;  %v143_v8 = vmax.f32 %v184_v4, -128.0  ;;  %v192_v10 = vsel %vm186_vm9, %v191_v6, %v136_v42 }
  0xba   :  { %v144_v13 = vmax.f32 %v192_v10, -128.0 }
  0xbb   :  { %v145_v9 = vmin.f32 %v141_v5, 127.0  ;;  %v146_v11 = vmin.f32 %v142_v7, 127.0  ;;  %v147_v12 = vmin.f32 %v143_v8, 127.0 }
  0xbc   :  { %v148_v17 = vmin.f32 %v144_v13, 127.0 }
  0xbd   :  { %v149_v14 = vmul.f32 %v145_v9, %v241_v28  ;;  %v150_v15 = vmul.f32 %v146_v11, %v241_v28  ;;  %v151_v16 = vmul.f32 %v147_v12, %v241_v28 }
  0xbe   :  { %v152_v18 = vmul.f32 %v148_v17, %v241_v28 }
  0xbf   :  { %153 = vst [vmem:[%s269_s1] sm:$0xff] %v149_v14 }
  0xc0   :  { %154 = vst [vmem:[%s269_s1 + $0x8] sm:$0xff] %v150_v15 }
  0xc1   :  { %155 = vst [vmem:[%s269_s1 + $0x10] sm:$0xff] %v151_v16 }
  0xc2   :  { %156 = vst [vmem:[%s269_s1 + $0x18] sm:$0xff] %v152_v18 }

</bundles_post_ra>
